<compile_context>
chip_gen: v6e
topology: v6e:2x2x1
jax: 0.10.0
libtpu: 0.0.40
codegen_flags: <defaults>
</compile_context>

<pallas_src>
import jax
import jax.numpy as jnp
from jax.experimental import pallas as pl
from jax.experimental.pallas import tpu as pltpu


# --------------------------------------------------------------------------
# Fused kernel
# --------------------------------------------------------------------------
def av_fusion_kernel(wT_ref, b_ref, vm_ref, am_ref, out_ref, vw_ref):
    # wT_ref : (C_v, C_a)            bf16  Conv1d weight, transposed
    # b_ref  : (1, C_a)              f32   Conv1d bias
    # vm_ref : (BT*WH, C_v)          bf16  vision features, batch tile folded into rows
    # am_ref : (BT, C_a, P)          bf16  audio feature map, batch tile
    # out_ref: (BT, WH, P)           out   fused AV feature, batch tile
    # vw_ref : (BT*WH, C_a)          bf16  VMEM scratch (ReLU'd intermediate)

    # (1) Conv1d(k=1) for the WHOLE batch tile as one canonical MXU matmul,
    #     f32 accumulation; bias broadcast + ReLU once per grid step in f32.
    vw = jnp.dot(vm_ref[...], wT_ref[...], preferred_element_type=jnp.float32)
    vw_ref[...] = jnp.maximum(vw + b_ref[...], 0.0).astype(vw_ref.dtype)

    bt, wh, _ = out_ref.shape

    # (2) torch.bmm(vision_W^T, audiomap): per-sample canonical (WH,C_a)@(C_a,P)
    #     dots, LHS taken as sublane-aligned row slices of the scratch.
    @pl.loop(0, bt)
    def _(t):
        row0 = pl.multiple_of(t * wh, 8)
        vw_t = vw_ref[pl.ds(row0, wh), :]                       # (WH, C_a) bf16
        out_ref[t] = jnp.dot(
            vw_t, am_ref[t], preferred_element_type=jnp.float32
        ).astype(out_ref.dtype)


# --------------------------------------------------------------------------
# Wrapper: layout plumbing, padding, tiling policy, pallas_call
# --------------------------------------------------------------------------
def _round_up(x, m):
    return (x + m - 1) // m * m


def _largest_divisor_leq(n, cap):
    cap = max(1, min(int(cap), n))
    for d in range(cap, 0, -1):
        if n % d == 0:
            return d
    return 1


def av_fusion_block(fusion_w, fusion_b, audiomap, visionmap, *,
                    batch_tile=None, out_dtype=jnp.float32):
    B, C_v, Hv, Wv = visionmap.shape
    Ba, C_a, Ha, Wa = audiomap.shape
    assert Ba == B, "audio / vision batch mismatch"
    WH = Hv * Wv
    P = Ha * Wa
    WH_pad = _round_up(WH, 8)       # sublane alignment for row slices / stores
    P_pad = _round_up(P, 128)       # lane-dense output stores

    # ---- wrapper-side layout (done once in XLA) ----------------------------
    wT = jnp.transpose(fusion_w.reshape(C_a, C_v)).astype(jnp.bfloat16)   # (C_v, C_a)
    b2 = fusion_b.reshape(1, C_a).astype(jnp.float32)                     # (1,  C_a)

    vm = jnp.swapaxes(visionmap.reshape(B, C_v, WH), 1, 2)                # (B, WH, C_v)
    if WH_pad != WH:
        vm = jnp.pad(vm, ((0, 0), (0, WH_pad - WH), (0, 0)))
    vm = vm.reshape(B * WH_pad, C_v).astype(jnp.bfloat16)                 # (B*WH_pad, C_v)

    am = audiomap.reshape(B, C_a, P)
    if P_pad != P:
        am = jnp.pad(am, ((0, 0), (0, 0), (0, P_pad - P)))
    am = am.astype(jnp.bfloat16)                                          # (B, C_a, P_pad)

    # ---- tiling policy / VMEM budget ---------------------------------------
    out_itemsize = jnp.dtype(out_dtype).itemsize
    vm_elem = WH_pad * C_v * 2
    am_elem = C_a * P_pad * 2
    out_elem = WH_pad * P_pad * out_itemsize
    vw_elem = WH_pad * C_a * 2
    fixed = 2 * (C_v * C_a * 2 + C_a * 4)                  # double-buffered w + bias
    per_elem_db = 2 * (vm_elem + am_elem + out_elem) + vw_elem

    VMEM_BUDGET = 40 * 1024 * 1024                          # safe under v7x's 64 MiB
    bt_budget = max(1, (VMEM_BUDGET - fixed) // per_elem_db)

    io_elem = vm_elem + am_elem + out_elem
    # >= 8 pipelined steps when blocks are sizable (v7x: 4/TC), else >= 2 steps.
    desired_steps = 8 if (B >= 8 and io_elem >= 64 * 1024) else min(B, 2)
    bt_steps = max(1, B // max(1, desired_steps))

    if batch_tile is None:
        batch_tile = min(bt_budget, bt_steps)
    else:
        batch_tile = min(int(batch_tile), bt_budget)        # never exceed VMEM budget
    batch_tile = _largest_divisor_leq(B, batch_tile)        # clamped, divides B, >= 1
    grid = (B // batch_tile,)

    vmem_need = (fixed + 2 * batch_tile * (vm_elem + am_elem + out_elem)
                 + batch_tile * vw_elem)
    vmem_limit = int(min(max(vmem_need * 1.25 + (1 << 20), 16 << 20), 60 << 20))

    cost = pl.CostEstimate(
        flops=2 * B * WH_pad * C_a * (C_v + P_pad),
        transcendentals=0,
        bytes_accessed=(B * WH_pad * C_v * 2 + B * C_a * P_pad * 2
                        + B * WH_pad * P_pad * out_itemsize
                        + C_v * C_a * 2 + C_a * 4),
    )

    out_flat = pl.pallas_call(
        av_fusion_kernel,
        out_shape=jax.ShapeDtypeStruct((B, WH_pad, P_pad), out_dtype),
        grid=grid,
        in_specs=[
            pl.BlockSpec((C_v, C_a), lambda i: (0, 0)),
            pl.BlockSpec((1, C_a), lambda i: (0, 0)),
            pl.BlockSpec((batch_tile * WH_pad, C_v), lambda i: (i, 0)),
            pl.BlockSpec((batch_tile, C_a, P_pad), lambda i: (i, 0, 0)),
        ],
        out_specs=pl.BlockSpec((batch_tile, WH_pad, P_pad), lambda i: (i, 0, 0)),
        scratch_shapes=[pltpu.VMEM((batch_tile * WH_pad, C_a), jnp.bfloat16)],
        compiler_params=pltpu.CompilerParams(
            dimension_semantics=("parallel",),
            vmem_limit_bytes=vmem_limit),
        cost_estimate=cost,
    )(wT, b2, vm, am)

    if WH_pad != WH or P_pad != P:
        out_flat = out_flat[:, :WH, :P]
    return out_flat.reshape(B, WH, Ha, Wa)


# --------------------------------------------------------------------------
# Pure-JAX reference (PyTorch forward semantics); optional bf16 quantization
# of the MXU operands to reproduce exactly what the kernel computes.
# --------------------------------------------------------------------------
def reference_forward(fusion_w, fusion_b, audiomap, visionmap, mxu_dtype=None):
    if mxu_dtype is not None:
        cast = lambda x: x.astype(mxu_dtype).astype(jnp.float32)
    else:
        cast = lambda x: x
    B, C_v, Hv, Wv = visionmap.shape
    _, C_a, Ha, Wa = audiomap.shape
    vm = visionmap.reshape(B, C_v, Hv * Wv)
    w2d = fusion_w.reshape(C_a, C_v)
    vW = jnp.einsum('oc,bcw->bow', cast(w2d), cast(vm),
                    precision=jax.lax.Precision.HIGHEST)
    vW = vW + fusion_b[None, :, None]
    vW = jnp.maximum(vW, 0.0)
    vW = jnp.swapaxes(vW, 1, 2)                                  # (B, WH, C_a)
    am = audiomap.reshape(B, C_a, Ha * Wa)
    out = jnp.einsum('bwc,bcp->bwp', cast(vW), cast(am),
                     precision=jax.lax.Precision.HIGHEST)
    return out.reshape(B, Hv * Wv, Ha, Wa)


# --------------------------------------------------------------------------
if __name__ == "__main__":
    key = jax.random.PRNGKey(0)

    # ---- test 1: aligned shapes (WH mult of 8, P mult of 128) --------------
    B = 2
    C_a, C_v = 16, 32          # audio_channel, vision_channel
    Hv, Wv = 2, 4              # vision spatial   -> WH = 8
    Ha, Wa = 16, 8             # audio-map spatial -> P = 128

    ks = jax.random.split(key, 4)
    fusion_w = jax.random.normal(ks[0], (C_a, C_v, 1), jnp.float32) / jnp.sqrt(C_v)
    fusion_b = jax.random.normal(ks[1], (C_a,), jnp.float32) * 0.1
    visionmap = jax.random.normal(ks[2], (B, C_v, Hv, Wv), jnp.float32)
    audiomap = jax.random.normal(ks[3], (B, C_a, Ha, Wa), jnp.float32)

    out = av_fusion_block(fusion_w, fusion_b, audiomap, visionmap)
    jax.block_until_ready(out)
    assert out.shape == (B, Hv * Wv, Ha, Wa)

    ref_q = reference_forward(fusion_w, fusion_b, audiomap, visionmap,
                              mxu_dtype=jnp.bfloat16)
    assert jnp.allclose(out, ref_q, atol=2e-3, rtol=2e-3), \
        float(jnp.max(jnp.abs(out - ref_q)))

    ref_f32 = reference_forward(fusion_w, fusion_b, audiomap, visionmap)
    assert jnp.allclose(out, ref_f32, atol=1e-1, rtol=1e-1), \
        float(jnp.max(jnp.abs(out - ref_f32)))

    # ---- test 2: unaligned shapes exercise the WH/P padding path -----------
    B2, C_a2, C_v2 = 3, 12, 24
    Hv2, Wv2 = 2, 3            # WH = 6  -> padded to 8
    Ha2, Wa2 = 10, 10          # P = 100 -> padded to 128
    ks2 = jax.random.split(jax.random.PRNGKey(1), 4)
    w2 = jax.random.normal(ks2[0], (C_a2, C_v2, 1), jnp.float32) / jnp.sqrt(C_v2)
    b2 = jax.random.normal(ks2[1], (C_a2,), jnp.float32) * 0.1
    vmap2 = jax.random.normal(ks2[2], (B2, C_v2, Hv2, Wv2), jnp.float32)
    amap2 = jax.random.normal(ks2[3], (B2, C_a2, Ha2, Wa2), jnp.float32)

    out2 = av_fusion_block(w2, b2, amap2, vmap2)
    jax.block_until_ready(out2)
    assert out2.shape == (B2, Hv2 * Wv2, Ha2, Wa2)
    ref2 = reference_forward(w2, b2, amap2, vmap2, mxu_dtype=jnp.bfloat16)
    assert jnp.allclose(out2, ref2, atol=2e-3, rtol=2e-3), \
        float(jnp.max(jnp.abs(out2 - ref2)))

    print("KERNEL_OK")
</pallas_src>

<mosaic_0001>
module attributes {stable_mosaic.version = 11 : i64} {
  func.func @av_fusion_kernel(%arg0: i32, %arg1: memref<32x16xbf16, #tpu.memory_space<vmem>>, %arg2: memref<1x16xf32, #tpu.memory_space<vmem>>, %arg3: memref<8x32xbf16, #tpu.memory_space<vmem>>, %arg4: memref<1x16x128xbf16, #tpu.memory_space<vmem>>, %arg5: memref<1x8x128xf32, #tpu.memory_space<vmem>>, %arg6: memref<8x16xbf16, #tpu.memory_space<vmem>>) attributes {dimension_semantics = [#tpu.dimension_semantics<parallel>], iteration_bounds = array<i64: 2>, scalar_prefetch = 0 : i64, scratch_operands = 1 : i64, tpu.core_type = #tpu.core_type<tc>, window_params = [{pipeline_mode = #tpu.pipeline_mode<synchronous>, transform_indices = @transform_0, window_bounds = array<i64: 32, 16>}, {pipeline_mode = #tpu.pipeline_mode<synchronous>, transform_indices = @transform_1, window_bounds = array<i64: 1, 16>}, {transform_indices = @transform_2, window_bounds = array<i64: 8, 32>}, {transform_indices = @transform_3, window_bounds = array<i64: 1, 16, 128>}, {transform_indices = @transform_4, window_bounds = array<i64: 1, 8, 128>}]} {
    %c0 = arith.constant 0 : index
    %c0_0 = arith.constant 0 : index
    %0 = vector.load %arg3[%c0, %c0_0] : memref<8x32xbf16, #tpu.memory_space<vmem>>, vector<8x32xbf16>
    %c0_1 = arith.constant 0 : index
    %c0_2 = arith.constant 0 : index
    %1 = vector.load %arg1[%c0_1, %c0_2] : memref<32x16xbf16, #tpu.memory_space<vmem>>, vector<32x16xbf16>
    %cst = arith.constant dense<0.000000e+00> : vector<8x16xf32>
    %2 = tpu.matmul %0, %1, %cst {dimension_numbers = #tpu.dot_dimension_numbers<[1], [0], [0], [1], [0, 0, 1, 1], [], []>} : vector<8x32xbf16>, vector<32x16xbf16>, vector<8x16xf32> -> vector<8x16xf32>
    %c0_3 = arith.constant 0 : index
    %c0_4 = arith.constant 0 : index
    %3 = vector.load %arg2[%c0_3, %c0_4] : memref<1x16xf32, #tpu.memory_space<vmem>>, vector<1x16xf32>
    %4 = vector.broadcast %3 : vector<1x16xf32> to vector<8x16xf32>
    %5 = arith.addf %2, %4 : vector<8x16xf32>
    %cst_5 = arith.constant 0.000000e+00 : f32
    %6 = vector.broadcast %cst_5 : f32 to vector<8x16xf32>
    %7 = arith.maximumf %5, %6 : vector<8x16xf32>
    %8 = arith.truncf %7 : vector<8x16xf32> to vector<8x16xbf16>
    %c0_6 = arith.constant 0 : index
    %c0_7 = arith.constant 0 : index
    %9 = vector.load %arg6[%c0_6, %c0_7] : memref<8x16xbf16, #tpu.memory_space<vmem>>, vector<8x16xbf16>
    tpu.vector_store %arg6[%c0_6, %c0_7], %8 {strides = array<i32>} : memref<8x16xbf16, #tpu.memory_space<vmem>>, vector<8x16xbf16>,
    %c0_i32 = arith.constant 0 : i32
    %c1_i32 = arith.constant 1 : i32
    %10 = arith.muli %c0_i32, %c1_i32 : i32
    %c0_i32_8 = arith.constant 0 : i32
    %11 = arith.addi %c0_i32_8, %10 : i32
    %c8_i32 = arith.constant 8 : i32
    %12 = arith.muli %11, %c8_i32 : i32
    %13 = tpu.assume_multiple %12, 8 : i32
    %14 = arith.index_cast %13 : i32 to index
    %c0_9 = arith.constant 0 : index
    %15 = vector.load %arg6[%14, %c0_9] : memref<8x16xbf16, #tpu.memory_space<vmem>>, vector<8x16xbf16>
    %16 = arith.index_cast %11 : i32 to index
    %c0_10 = arith.constant 0 : index
    %c0_11 = arith.constant 0 : index
    %17 = vector.load %arg4[%16, %c0_10, %c0_11] : memref<1x16x128xbf16, #tpu.memory_space<vmem>>, vector<1x16x128xbf16>
    %18 = vector.shape_cast %17 : vector<1x16x128xbf16> to vector<16x128xbf16>
    %cst_12 = arith.constant dense<0.000000e+00> : vector<8x128xf32>
    %19 = tpu.matmul %15, %18, %cst_12 {dimension_numbers = #tpu.dot_dimension_numbers<[1], [0], [0], [1], [0, 0, 1, 1], [], []>} : vector<8x16xbf16>, vector<16x128xbf16>, vector<8x128xf32> -> vector<8x128xf32>
    %20 = arith.index_cast %11 : i32 to index
    %c0_13 = arith.constant 0 : index
    %c0_14 = arith.constant 0 : index
    %21 = vector.load %arg5[%20, %c0_13, %c0_14] : memref<1x8x128xf32, #tpu.memory_space<vmem>>, vector<1x8x128xf32>
    %22 = vector.shape_cast %21 : vector<1x8x128xf32> to vector<8x128xf32>
    %23 = vector.shape_cast %19 : vector<8x128xf32> to vector<1x8x128xf32>
    tpu.vector_store %arg5[%20, %c0_13, %c0_14], %23 {strides = array<i32>} : memref<1x8x128xf32, #tpu.memory_space<vmem>>, vector<1x8x128xf32>,
    %c1_i32_15 = arith.constant 1 : i32
    return
  }
  func.func @transform_0(%arg0: i32) -> (i32, i32) {
    %c0_i32 = arith.constant 0 : i32
    %c0_i32_0 = arith.constant 0 : i32
    %c0_i32_1 = arith.constant 0 : i32
    return %c0_i32, %c0_i32_0 : i32, i32
  }
  func.func @transform_1(%arg0: i32) -> (i32, i32) {
    %c0_i32 = arith.constant 0 : i32
    %c0_i32_0 = arith.constant 0 : i32
    %c0_i32_1 = arith.constant 0 : i32
    return %c0_i32, %c0_i32_0 : i32, i32
  }
  func.func @transform_2(%arg0: i32) -> (i32, i32) {
    %c0_i32 = arith.constant 0 : i32
    %c0_i32_0 = arith.constant 0 : i32
    return %arg0, %c0_i32 : i32, i32
  }
  func.func @transform_3(%arg0: i32) -> (i32, i32, i32) {
    %c0_i32 = arith.constant 0 : i32
    %c0_i32_0 = arith.constant 0 : i32
    %c0_i32_1 = arith.constant 0 : i32
    return %arg0, %c0_i32, %c0_i32_0 : i32, i32, i32
  }
  func.func @transform_4(%arg0: i32) -> (i32, i32, i32) {
    %c0_i32 = arith.constant 0 : i32
    %c0_i32_0 = arith.constant 0 : i32
    %c0_i32_1 = arith.constant 0 : i32
    return %arg0, %c0_i32, %c0_i32_0 : i32, i32, i32
  }
}

</mosaic_0001>

<bundles_post_ra>
// kernel: tpu_custom_call.1
= control target key start
LH: loop header
LB: loop body
LE: loop exit
PB: predicated region body
PF: predicated region fallthrough
CT: control target
= control target key end

     0   :  { %9 = vsyncpa [#allocation4], 0  ;;  %s708_s0 = inlined_call_operand.vmem [shape: bf16[32,16], index: 0, kind: input, shape index: {}]   ;;  %s709_s1 = inlined_call_operand.vmem [shape: f32[1,16], index: 1, kind: input, shape index: {}]   ;;  %s710_s2 = inlined_call_operand.vmem [shape: bf16[16,32], index: 2, kind: input, shape index: {}]   ;;  %s711_s3 = inlined_call_operand.vmem [shape: bf16[2,16,128], index: 3, kind: input, shape index: {}]   ;;  %s712_s4 = inlined_call_operand.hbm [shape: f32[2,8,128], index: 4, kind: output, shape index: {}]  }
   0x1   :  { %11 = vsyncpa [#allocation4 + $0x1], 0  ;;  %s597_s15 = smov 0   ;;  %s599_s16 = smov 0  }
   0x2   :  { %s601_s17 = smov 0   ;;  %s603_s18 = smov 0  }
   0x3 LB: > { %s618_s19 = sadd.s32 4294967295, %s567_s18   ;;  %s425_s20 = sadd.s32 4294967294, %s567_s18   ;;  %s567_s18 = sphi %s603_s18, %s718_s18   ;;  %s563_s17 = sphi %s601_s17, %s717_s17   ;;  %s559_s16 = sphi %s599_s16, %s716_s16   ;;  %s555_s15 = sphi %s597_s15, %s715_s15  }
   0x4   : > { %s622_s21 = sadd.s32 1, %s567_s18   ;;  %s118_s22 = sadd.s32 1, %s563_s17 }
   0x5   : > { %s115_s23 = ssub.s32 %s567_s18, %s622_s21  ;;  %p128_p0 = scmp.ne.s32.totalorder %s563_s17, %s559_s16 }
   0x6   : > { %p116_p1 = scmp.eq.s32.totalorder %s115_s23, 0  ;;  %p129_p2 = scmp.eq.s32.totalorder %s618_s19, 1 }
   0x7   : > { %p134_p3 = scmp.ne.s32.totalorder %s559_s16, %s555_s15  ;;  %p135_p4 = scmp.eq.s32.totalorder %s425_s20, 1 }
   0x8   : > { %s633_s24 = scalar_select %p116_p1, %s563_s17, %s118_s22  }
   0x9   : > { %p635_p5 = por %p129_p2, %p128_p0  ;;  %p639_p6 = por %p135_p4, %p134_p3 }
   0xa   : > { %p428_p7 = scmp.ge.s32.totalorder %s567_s18, 1  ;;  %p174_p8 = scmp.lt.s32.totalorder %s567_s18, 3 }
   0xc   : > { %p175_p9 = pnand %p428_p7, %p174_p8 }
   0xd   : > { %p204_p10 = scmp.lt.s32.totalorder (!%p175_p9), %s618_s19, 1  ;;  %s201_s22 = sand.u32 (!%p175_p9), 1, %s559_s16  }
   0xe   : > { %178 = sbr.rel (%p175_p9) target bundleno = 444 (0x1bc), region = 36  ;;  %s429_s23 = sshll.u32 (!%p175_p9), %s201_s22, 3 }
   0xf   : > { %s203_s27 = scalar_lea.vmem (!%p175_p9), [#allocation3], %s429_s23  ;;  %s440_s29 = sshll.u32 (!%p175_p9), %s618_s19, 7 }
  0x10   : > { %s354_s28 = sshll.u32 (!%p175_p9), %s203_s27, 4  ;;  %s341_s7 = scalar_lea.sflag (!%p175_p9), [#allocation4], %s201_s22  ;;  %s664_s28 = int_to_ptr.vmem [resolvable:$true] %s354_s28 }
  0x11   : > { %s507_s8 = scalar_lea.vmem (!%p175_p9), %s664_s28, 128 }
  0x12   : > { %p508_p11 = scmp.ne.s32.totalorder (!%p175_p9), %s664_s28, %s507_s8 }
  0x13   : > { %v504_v0 = vld [vmem:[%s708_s0 + $0x8] sm:$0xff]   ;;  %v569_v1 = vmov 0.0   ;;  %v505_v2 = vld [vmem:[%s708_s0] sm:$0xff]   ;;  %vm570_vm0 = vmmov 0   ;;  %s205_s5 = scalar_select %p204_p10, %s618_s19, 1  ;;  %vm238_vm1 = vcmask 261120  }
  0x14   : > { %449 = vmatprep.subr.bf16.mxu0 %v569_v1  ;;  %457 = vmatprep.subr.bf16.mxu1 %v569_v1  ;;  %v433_v5 = vld [vmem:[%s709_s1] ss:$0 sm:$0xff]  ;;  %vm284_vm2 = vcmask 125952   ;;  %vm295_vm3 = vcmask 130048   ;;  %p509_p12 = pnand %p508_p11, %p635_p5  ;;  %s571_s19 = smov [#allocation3]  }
  0x15   : > { %450 = vmatpush3.bf16.msra.mxu0 %v504_v0  ;;  %453 = vmatprep.mubr.msk.bf16.mxu0 %vm570_vm0, %v569_v1  ;;  %s430_s6 = sshll.u32 %s205_s5, 2  ;;  %s443_s10 = sshll.u32 %s205_s5, 3 }
  0x16   : > { %451 = vmatprep.subr.bf16.mxu0 %v569_v1  ;;  %459 = vmatprep.mubr.msk.bf16.mxu1 %vm570_vm0, %v569_v1  ;;  %s207_s9 = scalar_lea.vmem %s710_s2, %s430_s6  ;;  %s212_s13 = scalar_lea.vmem %s711_s3, %s443_s10 }
  0x17   : > { %v214_v3 = vld [vmem:[%s207_s9] sm:$0xf]  ;;  %s669_s6 = scalar_lea.hbm %s712_s4, %s440_s29  ;;  %p510_p13 = pneg %p509_p12 }
  0x18   : > { %v506_v4 = vld [vmem:[%s212_s13] sm:$0xff]   ;;  %s511_s9 = sshll.u32 %s571_s19, 4  ;;  %s512_s9 = int_to_ptr.vmem [resolvable:$false] %s511_s9 }
  0x19   : > { %452 = vmatpush3.bf16.msra.mxu0 %v505_v2  ;;  %458 = vmatpush3.bf16.msra.mxu1 %v506_v4  ;;  %s513_s10 = scalar_lea.vmem %s512_s9, 256  ;;  %p514_p0 = scmp.lt.s32.totalorder %s664_s28, %s512_s9 }
  0x1a   : > { %p515_p1 = scmp.lt.s32.totalorder %s513_s10, %s507_s8 }
  0x1c   : > { %454 = vmatmul.mubr.msk.bf16.vlgmr.msra.gmra.mxu0 %vm238_vm1, %v214_v3  ;;  %p516_p2 = por %p515_p1, %p514_p0 }
  0x1e   : > { %p517_p3 = pnand %p516_p2, %p510_p13 }
  0xdc   : > { %v276_v6 = vpop.f32.mrf.mxu0 }
  0xdd   : > { %v277_v7 = vadd.f32 %v433_v5, %v276_v6 }
  0xde   : > { %v455_v8 = vpop.f32.mrf.mxu0 }
  0xdf   : > { %v282_v9 = vmax.f32 %v277_v7, 0.0 }
  0xe0   : > { %v279_v10 = vpop.f32.mrf.mxu0 }
  0xe1   : > { %v283_v11 = vpack.c.bf16 %v282_v9, %v282_v9 }
  0xe2   : > { %v456_v12 = vpop.f32.mrf.mxu0 }
  0xe3   : > { %285 = vst.msk [vmem:[#allocation2] sm:$0xf] %vm284_vm2, %v283_v11 }
  0xea   : > { %v286_v13 = vld [vmem:[#allocation2] sm:$0xf] }
  0xeb   : > { %460 = vmatmul.mubr.msk.bf16.vlgmr.msra.gmra.mxu1 %vm295_vm3, %v286_v13 }
 0x1ab   : > { %v333_v14 = vpop.f32.mrf.mxu1 }
 0x1ac   : > { %339 = vst [vmem:[%s203_s27] sm:$0xff] %v333_v14 }
 0x1ad   : > { %v461_v15 = vpop.f32.mrf.mxu1 }
 0x1ae   : > { %520 = shalt.err (!%p517_p3)
}
 0x1af   : > { %s521_s11 = scalar_lea.hbm %s669_s6, 128  ;;  %s525_s14 = scalar_lea.hbm %s712_s4, 256 }
 0x1b0   : > { %p522_p4 = scmp.ne.s32.totalorder %s669_s6, %s521_s11  ;;  %p526_p9 = scmp.lt.s32.totalorder %s669_s6, %s712_s4 }
 0x1b1   : > { %p527_p10 = scmp.lt.s32.totalorder %s525_s14, %s521_s11 }
 0x1b2   : > { %p523_p7 = pnand %p522_p4, %p635_p5 }
 0x1b3   : > { %p528_p11 = por %p527_p10, %p526_p9 }
 0x1b4   : > { %p524_p8 = pneg %p523_p7 }
 0x1b6   : > { %p529_p12 = pnand %p528_p11, %p524_p8 }
 0x1b8   : > { %532 = shalt.err (!%p529_p12)
}
 0x1b9   : > { %463 = dma.vmem_to_hbm [thread:$0]  (%p635_p5), %s664_s28, 128, %s669_s6, %s341_s7   ;;  %v336_v16 = vpop.f32.mrf.mxu1 }
 0x1bb   : > { %v462_v17 = vpop.f32.mrf.mxu1 }
 0x1bc PF: > { %p469_p13 = scmp.ge.s32.totalorder %s567_s18, 2  ;;  %s366_s23 = sand.u32 1, %s555_s15  }
 0x1bd   : > { %s367_s27 = scalar_lea.sflag [#allocation4], %s366_s23 }
 0x1be   : > { %p466_p0 = pnand %p469_p13, %p639_p6 }
 0x1c0   : > { %p467_p1 = pneg %p466_p0 }
 0x1c2   : > { %550 = dma.done.wait (%p467_p1), %s367_s27, 128  }
 0x1c3   : > { %552 = vsyncadd (%p467_p1), %s367_s27, 4294967168  ;;  %p14_p5 = scmp.ge.s32.totalorder %s622_s21, 4   ;;  %s715_s15 = smov %s559_s16 }
 0x1c4   : > { %s716_s16 = smov %s563_s17  ;;  %s717_s17 = smov %s633_s24 }
 0x1c5   : > { %s718_s18 = smov %s622_s21  ;;  %16 = sbr.rel (!%p14_p5) target bundleno = 3 (0x3), region = 74 }
 0x1ca   :  { %372 = vsyncpa [#allocation4], 1 }
 0x1cb   :  { %374 = vsyncpa [#allocation4 + $0x1], 1 }

</bundles_post_ra>
